<compile_context>
chip_gen: v7x
topology: tpu7x:2x2x1
jax: 0.10.0
libtpu: 0.0.40
codegen_flags: <defaults>
</compile_context>

<pallas_src>
import functools
import numpy as np
import jax
import jax.numpy as jnp
from jax.experimental import pallas as pl
from jax.experimental.pallas import tpu as pltpu

LANE = 128      # all channel dims padded to a multiple of this (lane dense)
K_TILE = 512    # reduction tile / channel-padding granularity for large K


def _round_up(x, m):
    return (x + m - 1) // m * m


@functools.lru_cache(maxsize=None)
def _vmem_limit():
    """Generation-aware scoped-VMEM limit (derived from the chip)."""
    try:
        cap = int(pltpu.get_tpu_info().vmem_capacity_bytes)
    except Exception:
        return 64 * 1024 * 1024
    # ~40 MiB on v7x (64 MiB physical), capped at 100 MiB on v5e/v6e (128 MiB).
    return int(min(100 << 20, max(32 << 20, cap - (24 << 20))))


# ---------------------------------------------------------------------------
# Kernel 1: fused matmul (1x1 conv + bias [+ReLU] [+skip-add] [+log_softmax])
# ---------------------------------------------------------------------------
def _matmul_kernel(*refs, relu, logsm, n_valid, has_add):
    if has_add:
        x_ref, w_ref, b_ref, a_ref, o_ref, *acc = refs
    else:
        x_ref, w_ref, b_ref, o_ref, *acc = refs
        a_ref = None

    def _finalize(val):
        val = val + b_ref[...]
        if relu:
            val = jnp.maximum(val, 0.0)
        if a_ref is not None:                       # fused FPN skip-add
            val = val + a_ref[...].astype(jnp.float32)
        if logsm:                                   # masked log_softmax (classes)
            lane = jax.lax.broadcasted_iota(jnp.int32, val.shape, 1)
            val = jnp.where(lane < n_valid, val, -1e30)
            m = jnp.max(val, axis=-1, keepdims=True)
            z = val - m
            val = z - jnp.log(jnp.sum(jnp.exp(z), axis=-1, keepdims=True))
        o_ref[...] = val.astype(o_ref.dtype)

    if not acc:  # single K step: no f32 scratch zero/accumulate/readback passes
        _finalize(jnp.dot(x_ref[...], w_ref[...],
                          preferred_element_type=jnp.float32))
        return

    acc_ref = acc[0]
    k = pl.program_id(1)

    @pl.when(k == 0)
    def _():
        acc_ref[...] = jnp.zeros_like(acc_ref)

    acc_ref[...] += jnp.dot(x_ref[...], w_ref[...],
                            preferred_element_type=jnp.float32)

    @pl.when(k == pl.num_programs(1) - 1)
    def _():
        _finalize(acc_ref[...])


def fused_matmul(x, w, bias, *, relu=True, logsm=False, n_valid=None,
                 addend=None, out_dtype=jnp.bfloat16, tm=512, tk=K_TILE):
    """x:(M,K) @ w:(K,N) + bias:(1,N) [+addend (M,N)] [+ReLU] [+log_softmax].

    K, N must be multiples of 128.  K is zero-padded up to a multiple of tk
    when K > tk (no degenerate small K tiles)."""
    M, K = x.shape
    Kw, N = w.shape
    assert K == Kw and K % LANE == 0 and N % LANE == 0, (x.shape, w.shape)
    n_valid = N if n_valid is None else n_valid

    if K <= tk:
        tk, n_k = K, 1
    else:
        Kp = _round_up(K, tk)
        if Kp != K:
            x = jnp.pad(x, ((0, 0), (0, Kp - K)))
            w = jnp.pad(w, ((0, Kp - K), (0, 0)))
        n_k = Kp // tk

    tm = min(tm, _round_up(M, 8))
    Mp = _round_up(M, tm)
    if Mp != M:
        x = jnp.pad(x, ((0, Mp - M), (0, 0)))
        if addend is not None:
            addend = jnp.pad(addend, ((0, Mp - M), (0, 0)))

    has_add = addend is not None
    kernel = functools.partial(_matmul_kernel, relu=relu, logsm=logsm,
                               n_valid=n_valid, has_add=has_add)

    in_specs = [
        pl.BlockSpec((tm, tk), lambda i, k: (i, k)),
        pl.BlockSpec((tk, N), lambda i, k: (k, 0)),
        pl.BlockSpec((1, N), lambda i, k: (0, 0)),
    ]
    args = [x.astype(jnp.bfloat16), w.astype(jnp.bfloat16),
            bias.astype(jnp.float32)]
    if has_add:
        in_specs.append(pl.BlockSpec((tm, N), lambda i, k: (i, 0)))
        args.append(addend.astype(jnp.bfloat16))

    scratch = [] if n_k == 1 else [pltpu.VMEM((tm, N), jnp.float32)]
    # TODO(synk): pipeline_mode=pl.Buffered(3) on the weight spec for the tiny
    # per-step matmul cases if the weight-tile DMA shows up as exposed.

    out = pl.pallas_call(
        kernel,
        out_shape=jax.ShapeDtypeStruct((Mp, N), out_dtype),
        grid=(Mp // tm, n_k),
        in_specs=in_specs,
        out_specs=pl.BlockSpec((tm, N), lambda i, k: (i, 0)),
        scratch_shapes=scratch,
        compiler_params=pltpu.CompilerParams(
            dimension_semantics=("parallel", "arbitrary"),
            vmem_limit_bytes=_vmem_limit()),
    )(*args)
    return out[:M]


def conv1x1(x, p, *, relu=True, logsm=False, addend=None,
            out_dtype=jnp.bfloat16):
    """1x1 conv + folded BN (+ReLU) (+fused skip-add) (+log_softmax).  NHWC."""
    Nb, H, W, Cin = x.shape
    w = p["w"]                                     # (Cin_pad, Cout_pad)
    Cout = w.shape[-1]
    cols = x.reshape(Nb * H * W, Cin)
    add_cols = None if addend is None else addend.reshape(Nb * H * W, Cout)
    out = fused_matmul(cols, w, p["bias"], relu=relu, logsm=logsm,
                       n_valid=p.get("n_valid"), addend=add_cols,
                       out_dtype=out_dtype)
    return out.reshape(Nb, H, W, Cout)


# ---------------------------------------------------------------------------
# Kernel 2: 3x3 conv via per-tap full-height matmuls on flattened padded rows
# ---------------------------------------------------------------------------
def _conv3x3_kernel(x_ref, w_ref, b_ref, o_ref, *scratch, Wp, M_out, Rsh, relu):
    # x_ref : (R_in, tk)    flattened zero-padded image (row width Wp)
    # w_ref : (9, tk, Cout) tap-major weights (BN folded)
    # o_ref : (M_out, Cout) flattened output rows (M_out = H*Wp)
    sh_ref = scratch[0]                            # (2, Rsh, tk)
    acc_ref = scratch[1] if len(scratch) > 1 else None

    # Build the two dx>0 column-shifted planes once per k block; every tap
    # read below is then a plain row-offset (dy*Wp) slice.
    sh_ref[0] = x_ref[pl.ds(1, Rsh), :]
    sh_ref[1] = x_ref[pl.ds(2, Rsh), :]

    def tap(dy, dx):
        if dx == 0:
            patch = x_ref[pl.ds(dy * Wp, M_out), :]
        else:
            patch = sh_ref[dx - 1, pl.ds(dy * Wp, M_out), :]
        return jnp.dot(patch, w_ref[3 * dy + dx],
                       preferred_element_type=jnp.float32)

    # 9 full-size (M_out x tk) x (tk x Cout) MXU matmuls per k step.
    total = tap(0, 0)
    for t in range(1, 9):
        total = total + tap(t // 3, t % 3)

    def _finalize(val):
        val = val + b_ref[...]
        if relu:
            val = jnp.maximum(val, 0.0)
        o_ref[...] = val.astype(o_ref.dtype)       # one whole-block store

    if acc_ref is None:                            # single K step: no scratch
        _finalize(total)
    else:
        k = pl.program_id(1)

        @pl.when(k == 0)
        def _():
            acc_ref[...] = jnp.zeros_like(acc_ref)

        acc_ref[...] += total

        @pl.when(k == pl.num_programs(1) - 1)
        def _():
            _finalize(acc_ref[...])


def conv3x3(x, p, *, relu=True, tk=K_TILE):
    """3x3 conv (stride 1, padding 1) + folded BN (+ReLU) on NHWC input."""
    Nb, H, W, Cin = x.shape
    w = p["w"]                                     # (9, Cin_pad, Cout_pad)
    assert w.shape[0] == 9 and w.shape[1] == Cin and Cin % LANE == 0
    Cout = w.shape[-1]

    if Cin <= tk:
        tk, n_k, Kp = Cin, 1, Cin
    else:
        Kp = _round_up(Cin, tk)
        n_k = Kp // tk
        if Kp != Cin:                              # fallback; params pre-padded
            x = jnp.pad(x, ((0, 0), (0, 0), (0, 0), (0, Kp - Cin)))
            w = jnp.pad(w, ((0, 0), (0, Kp - Cin), (0, 0)))

    Wp = _round_up(W + 2, 8)                       # padded row width (8-aligned)
    M_out = H * Wp                                 # output rows per image
    Rsh = M_out + 2 * Wp                           # rows reachable by dy=2 taps
    R_in = Rsh + 8                                 # + zero tail for shifted planes

    xp = jnp.pad(x.astype(jnp.bfloat16),
                 ((0, 0), (1, 1), (1, Wp - W - 1), (0, 0)))
    xf = xp.reshape(Nb, (H + 2) * Wp, Kp)
    xf = jnp.pad(xf, ((0, 0), (0, R_in - (H + 2) * Wp), (0, 0)))
    # TODO(synk): handle the 1-pixel border in-kernel (mask edge taps) to avoid
    # this padded copy of the feature map at real sizes.

    kernel = functools.partial(_conv3x3_kernel, Wp=Wp, M_out=M_out, Rsh=Rsh,
                               relu=relu)
    scratch = [pltpu.VMEM((2, Rsh, tk), jnp.bfloat16)]
    if n_k > 1:
        scratch.append(pltpu.VMEM((M_out, Cout), jnp.float32))

    # TODO(synk): for real-size feature maps (e.g. 128x128, Cout=512) tile the
    # output rows with a 2*Wp-row halo via manual DMA so blocks fit v7x's
    # 64 MiB VMEM and the row-tile axis can feed both TensorCores.
    out = pl.pallas_call(
        kernel,
        out_shape=jax.ShapeDtypeStruct((Nb, M_out, Cout), jnp.bfloat16),
        grid=(Nb, n_k),
        in_specs=[
            pl.BlockSpec((None, R_in, tk), lambda b, k: (b, 0, k)),
            pl.BlockSpec((9, tk, Cout), lambda b, k: (0, k, 0)),
            pl.BlockSpec((1, Cout), lambda b, k: (0, 0)),
        ],
        out_specs=pl.BlockSpec((None, M_out, Cout), lambda b, k: (b, 0, 0)),
        scratch_shapes=scratch,
        compiler_params=pltpu.CompilerParams(
            dimension_semantics=("parallel", "arbitrary"),
            vmem_limit_bytes=_vmem_limit()),
    )(xf, w.astype(jnp.bfloat16), p["bias"].astype(jnp.float32))

    return out.reshape(Nb, H, Wp, Cout)[:, :, :W, :]


# ---------------------------------------------------------------------------
# Resize / pooling glue (exact PyTorch semantics, tiny separable matrices)
# ---------------------------------------------------------------------------
def _bilinear_matrix(in_size, out_size):
    # matches torch interpolate(mode='bilinear', align_corners=False)
    A = np.zeros((out_size, in_size), np.float32)
    scale = in_size / out_size
    for d in range(out_size):
        real = max(scale * (d + 0.5) - 0.5, 0.0)
        i0 = min(int(np.floor(real)), in_size - 1)
        i1 = i0 + 1 if i0 < in_size - 1 else i0
        l1 = real - i0
        A[d, i0] += 1.0 - l1
        A[d, i1] += l1
    return A


def _adaptive_pool_matrix(in_size, out_size):
    # matches torch nn.AdaptiveAvgPool2d bin boundaries
    A = np.zeros((out_size, in_size), np.float32)
    for i in range(out_size):
        start = (i * in_size) // out_size
        end = -(-((i + 1) * in_size) // out_size)
        A[i, start:end] = 1.0 / (end - start)
    return A


def bilinear_resize(x, out_hw):
    # x: NHWC.  TODO(synk): fuse these tiny separable matmuls into the
    # consuming Pallas kernels to remove the intermediate HBM round trip.
    N, H, W, C = x.shape
    Ho, Wo = out_hw
    if (H, W) == (Ho, Wo):
        return x
    Ah = jnp.asarray(_bilinear_matrix(H, Ho))
    Aw = jnp.asarray(_bilinear_matrix(W, Wo))
    return jnp.einsum("ab,ed,nbdc->naec", Ah, Aw, x).astype(x.dtype)


def adaptive_avg_pool(x, out_size):
    N, H, W, C = x.shape
    Ah = jnp.asarray(_adaptive_pool_matrix(H, out_size))
    Aw = jnp.asarray(_adaptive_pool_matrix(W, out_size))
    return jnp.einsum("ab,ed,nbdc->naec", Ah, Aw, x).astype(x.dtype)


# ---------------------------------------------------------------------------
# Parameters (synthetic init; eval-mode BN folded; kernel-ready layouts)
# ---------------------------------------------------------------------------
def _cmask(c_real):
    return np.arange(_round_up(c_real, LANE)) < c_real


def _make_conv_bn(key, in_mask, cout, ksize):
    """Conv(ksize)+BN in padded lane-dense layout; BN scale folded into the
    weights; padded channels get zero weights/bias.  Weights are stored in the
    kernel-ready layout: (Cin,Cout) for 1x1, tap-major (9,Cin,Cout) for 3x3."""
    cin_pad = int(in_mask.shape[0])
    cout_pad = _round_up(cout, LANE)
    kw_, kg, kb, km, kv = jax.random.split(key, 5)
    w = jax.random.normal(kw_, (ksize, ksize, cin_pad, cout_pad), jnp.float32) * 0.05
    gamma = jax.random.uniform(kg, (cout_pad,), minval=0.5, maxval=1.5)
    beta = jax.random.normal(kb, (cout_pad,), jnp.float32) * 0.1
    mean = jax.random.normal(km, (cout_pad,), jnp.float32) * 0.1
    var = jax.random.uniform(kv, (cout_pad,), minval=0.5, maxval=1.5)
    scale = gamma / jnp.sqrt(var + 1e-5)
    in_m = jnp.asarray(in_mask, jnp.float32)
    out_m = jnp.asarray(_cmask(cout), jnp.float32)
    w = w * scale[None, None, None, :]                       # fold BN scale
    w = w * in_m[None, None, :, None] * out_m[None, None, None, :]
    bias = (beta - mean * scale) * out_m                     # folded BN bias
    if ksize == 1:
        w = w.reshape(cin_pad, cout_pad)
    else:
        w = w.reshape(ksize * ksize, cin_pad, cout_pad)      # tap-major
    return dict(w=w.astype(jnp.bfloat16),
                bias=bias.reshape(1, cout_pad).astype(jnp.float32))


def make_upernet_params(key, num_class, fc_dim, pool_scales, fpn_inplanes,
                        fpn_dim, ppm_mid=512):
    keys = iter(jax.random.split(key, 64))
    params = {}
    conv5_mask = _cmask(fc_dim)
    params["ppm"] = [_make_conv_bn(next(keys), conv5_mask, ppm_mid, 1)
                     for _ in pool_scales]
    ppm_cat_mask = np.concatenate([conv5_mask] + [_cmask(ppm_mid)] * len(pool_scales))
    # pre-pad the 3x3 conv's Cin to a K_TILE multiple (no remainder K tiles)
    k_pad = _round_up(ppm_cat_mask.shape[0], K_TILE) - ppm_cat_mask.shape[0]
    if k_pad:
        ppm_cat_mask = np.concatenate([ppm_cat_mask, np.zeros(k_pad, bool)])
    params["ppm_last"] = _make_conv_bn(next(keys), ppm_cat_mask, fpn_dim, 3)
    params["fpn_in"] = [_make_conv_bn(next(keys), _cmask(c), fpn_dim, 1)
                        for c in fpn_inplanes[:-1]]
    params["fpn_out"] = [_make_conv_bn(next(keys), _cmask(fpn_dim), fpn_dim, 3)
                         for _ in range(len(fpn_inplanes) - 1)]
    fusion_mask = np.concatenate([_cmask(fpn_dim)] * len(fpn_inplanes))
    params["last0"] = _make_conv_bn(next(keys), fusion_mask, fpn_dim, 3)
    # final 1x1 classifier conv (bias, no BN)
    kw_, kb = jax.random.split(next(keys))
    cin_pad = _round_up(fpn_dim, LANE)
    cout_pad = _round_up(num_class, LANE)
    in_m = jnp.asarray(_cmask(fpn_dim), jnp.float32)
    out_m = jnp.asarray(_cmask(num_class), jnp.float32)
    w = jax.random.normal(kw_, (cin_pad, cout_pad), jnp.float32) * 0.05
    w = w * in_m[:, None] * out_m[None, :]
    bias = jax.random.normal(kb, (cout_pad,), jnp.float32) * 0.1 * out_m
    params["last1"] = dict(w=w.astype(jnp.bfloat16),
                           bias=bias.reshape(1, cout_pad).astype(jnp.float32),
                           n_valid=num_class)
    return params


# ---------------------------------------------------------------------------
# UPerNet forward (use_softmax=False path -> log_softmax over classes)
# ---------------------------------------------------------------------------
def upernet_forward(conv_out, params, pool_scales=(1, 2, 3, 6)):
    num_class = params["last1"]["n_valid"]

    # single NCHW->NHWC transpose + lane padding at the input
    feats = []
    for x in conv_out:
        xh = jnp.transpose(x, (0, 2, 3, 1))
        cpad = _round_up(xh.shape[-1], LANE)
        xh = jnp.pad(xh, ((0, 0), (0, 0), (0, 0), (0, cpad - xh.shape[-1])))
        feats.append(xh.astype(jnp.bfloat16))

    conv5 = feats[-1]
    Nb, H5, W5, _ = conv5.shape

    # PPM head
    ppm_out = [conv5]
    for scale, p in zip(pool_scales, params["ppm"]):
        pooled = adaptive_avg_pool(conv5, scale)
        up = bilinear_resize(pooled, (H5, W5))
        ppm_out.append(conv1x1(up, p, relu=True))            # 1x1 conv+BN+ReLU
    # fold the K_TILE channel padding for ppm_last into the concat itself
    cin_need = params["ppm_last"]["w"].shape[1]
    have = sum(t.shape[-1] for t in ppm_out)
    if have < cin_need:
        ppm_out.append(jnp.zeros((Nb, H5, W5, cin_need - have), jnp.bfloat16))
    ppm_cat = jnp.concatenate(ppm_out, axis=-1)
    f = conv3x3(ppm_cat, params["ppm_last"], relu=True)       # 3x3 conv+BN+ReLU

    # FPN top-down (skip-add fused into the 1x1 lateral conv kernel)
    fpn_feature_list = [f]
    for i in reversed(range(len(feats) - 1)):
        f_up = bilinear_resize(f, (feats[i].shape[1], feats[i].shape[2]))
        f = conv1x1(feats[i], params["fpn_in"][i], relu=True, addend=f_up)
        fpn_feature_list.append(conv3x3(f, params["fpn_out"][i], relu=True))
    fpn_feature_list.reverse()

    # Fusion
    out_hw = (fpn_feature_list[0].shape[1], fpn_feature_list[0].shape[2])
    fusion = [fpn_feature_list[0]] + [bilinear_resize(t, out_hw)
                                      for t in fpn_feature_list[1:]]
    fusion = jnp.concatenate(fusion, axis=-1)

    x = conv3x3(fusion, params["last0"], relu=True)
    # final 1x1 conv (+bias) and masked log_softmax over classes, in-kernel
    x = conv1x1(x, params["last1"], relu=False, logsm=True,
                out_dtype=jnp.float32)
    # TODO(synk): use_softmax=True inference branch (resize to segSize +
    # softmax) is not implemented; default use_softmax=False semantics only.
    x = x[..., :num_class]                       # drop padded class lanes
    return jnp.transpose(x, (0, 3, 1, 2))        # back to NCHW once, at output


# ---------------------------------------------------------------------------
if __name__ == "__main__":
    num_class = 8
    fc_dim = 32
    pool_scales = (1, 2, 3, 6)
    fpn_inplanes = (8, 16, 24, 32)
    fpn_dim = 16

    key = jax.random.PRNGKey(0)
    kp, k0, k1, k2, k3 = jax.random.split(key, 5)

    # Backbone feature pyramid (NCHW), strides doubling like a ResNet.
    conv_out = [
        jax.random.normal(k0, (2, fpn_inplanes[0], 16, 16), jnp.float32),
        jax.random.normal(k1, (2, fpn_inplanes[1], 8, 8), jnp.float32),
        jax.random.normal(k2, (2, fpn_inplanes[2], 4, 4), jnp.float32),
        jax.random.normal(k3, (2, fc_dim, 2, 2), jnp.float32),
    ]

    params = make_upernet_params(kp, num_class, fc_dim, pool_scales,
                                 fpn_inplanes, fpn_dim)

    out = jax.block_until_ready(upernet_forward(conv_out, params, pool_scales))

    # Sanity: output shape (N, num_class, H0, W0) and log_softmax normalizes.
    assert out.shape == (2, num_class, 16, 16), out.shape
    lse = np.asarray(jax.scipy.special.logsumexp(np.asarray(out, np.float32),
                                                 axis=1))
    assert np.allclose(lse, 0.0, atol=1e-4), float(np.abs(lse).max())
    assert np.isfinite(np.asarray(out)).all()

    print("KERNEL_OK")
</pallas_src>

<mosaic_0001>
module attributes {stable_mosaic.version = 11 : i64} {
  func.func @_matmul_kernel(%arg0: i32, %arg1: i32, %arg2: memref<8x128xbf16, #tpu.memory_space<vmem>>, %arg3: memref<128x512xbf16, #tpu.memory_space<vmem>>, %arg4: memref<1x512xf32, #tpu.memory_space<vmem>>, %arg5: memref<8x512xbf16, #tpu.memory_space<vmem>>) attributes {dimension_semantics = [#tpu.dimension_semantics<parallel>, #tpu.dimension_semantics<arbitrary>], iteration_bounds = array<i64: 1, 1>, scalar_prefetch = 0 : i64, scratch_operands = 0 : i64, tpu.core_type = #tpu.core_type<tc>, window_params = [{transform_indices = @transform_0, window_bounds = array<i64: 8, 128>}, {transform_indices = @transform_1, window_bounds = array<i64: 128, 512>}, {pipeline_mode = #tpu.pipeline_mode<synchronous>, transform_indices = @transform_2, window_bounds = array<i64: 1, 512>}, {transform_indices = @transform_3, window_bounds = array<i64: 8, 512>}]} {
    %c0 = arith.constant 0 : index
    %c0_0 = arith.constant 0 : index
    %0 = vector.load %arg2[%c0, %c0_0] : memref<8x128xbf16, #tpu.memory_space<vmem>>, vector<8x128xbf16>
    %c0_1 = arith.constant 0 : index
    %c0_2 = arith.constant 0 : index
    %1 = vector.load %arg3[%c0_1, %c0_2] : memref<128x512xbf16, #tpu.memory_space<vmem>>, vector<128x512xbf16>
    %cst = arith.constant dense<0.000000e+00> : vector<8x512xf32>
    %2 = tpu.matmul %0, %1, %cst {dimension_numbers = #tpu.dot_dimension_numbers<[1], [0], [0], [1], [0, 0, 1, 1], [], []>} : vector<8x128xbf16>, vector<128x512xbf16>, vector<8x512xf32> -> vector<8x512xf32>
    %c0_3 = arith.constant 0 : index
    %c0_4 = arith.constant 0 : index
    %3 = vector.load %arg4[%c0_3, %c0_4] : memref<1x512xf32, #tpu.memory_space<vmem>>, vector<1x512xf32>
    %4 = vector.broadcast %3 : vector<1x512xf32> to vector<8x512xf32>
    %5 = arith.addf %2, %4 : vector<8x512xf32>
    %cst_5 = arith.constant 0.000000e+00 : f32
    %6 = vector.broadcast %cst_5 : f32 to vector<8x512xf32>
    %7 = arith.maximumf %5, %6 : vector<8x512xf32>
    %8 = arith.truncf %7 : vector<8x512xf32> to vector<8x512xbf16>
    %c0_6 = arith.constant 0 : index
    %c0_7 = arith.constant 0 : index
    %9 = vector.load %arg5[%c0_6, %c0_7] : memref<8x512xbf16, #tpu.memory_space<vmem>>, vector<8x512xbf16>
    tpu.vector_store %arg5[%c0_6, %c0_7], %8 {strides = array<i32>} : memref<8x512xbf16, #tpu.memory_space<vmem>>, vector<8x512xbf16>,
    return
  }
  func.func @transform_0(%arg0: i32, %arg1: i32) -> (i32, i32) {
    %c0_i32 = arith.constant 0 : i32
    return %arg0, %arg1 : i32, i32
  }
  func.func @transform_1(%arg0: i32, %arg1: i32) -> (i32, i32) {
    %c0_i32 = arith.constant 0 : i32
    %c0_i32_0 = arith.constant 0 : i32
    return %arg1, %c0_i32 : i32, i32
  }
  func.func @transform_2(%arg0: i32, %arg1: i32) -> (i32, i32) {
    %c0_i32 = arith.constant 0 : i32
    %c0_i32_0 = arith.constant 0 : i32
    %c0_i32_1 = arith.constant 0 : i32
    return %c0_i32, %c0_i32_0 : i32, i32
  }
  func.func @transform_3(%arg0: i32, %arg1: i32) -> (i32, i32) {
    %c0_i32 = arith.constant 0 : i32
    %c0_i32_0 = arith.constant 0 : i32
    return %arg0, %c0_i32 : i32, i32
  }
}

</mosaic_0001>

<bundles_post_ra>
// kernel: tpu_custom_call.1
= control target key start
LH: loop header
LB: loop body
LE: loop exit
PB: predicated region body
PF: predicated region fallthrough
CT: control target
= control target key end

     0   :  { %8 = vsyncpa [#allocation3], 0  ;;  %s648_s0 = inlined_call_operand.hbm [shape: bf16[8,128], index: 0, kind: input, shape index: {}]   ;;  %s649_s1 = inlined_call_operand.hbm [shape: bf16[128,512], index: 1, kind: input, shape index: {}]   ;;  %s650_s2 = inlined_call_operand.hbm [shape: f32[1,512], index: 2, kind: input, shape index: {}]   ;;  %s651_s3 = inlined_call_operand.hbm [shape: bf16[8,512], index: 3, kind: output, shape index: {}]  }
   0x1   :  { %9 = vsyncpa [#allocation6], 0 }
   0x2   :  { %10 = vsyncpa [#allocation4], 0  ;;  %s573_s12 = smov [#allocation5]   ;;  %s479_s16 = scalar_lea.hbm %s649_s1, 4096 }
   0x3   :  { %s26_s13 = sshll.u32 %s573_s12, 4  ;;  %p480_p0 = scmp.ne.s32.totalorder %s649_s1, %s479_s16  ;;  %s27_s13 = int_to_ptr.vmem [resolvable:$true] %s26_s13 }
   0x4   :  { %p483_p1 = scmp.lt.u32.totalorder %s479_s16, %s649_s1 }
   0x6   :  { %p485_p2 = pnand %p483_p1, %p480_p0 }
   0x8   :  { %488 = shalt.err (!%p485_p2)
}
   0x9   :  { %s489_s21 = scalar_lea.vmem %s27_s13, 4096  ;;  %p494_p4 = scmp.lt.s32.totalorder %s27_s13, %s27_s13 }
   0xa   :  { %p490_p3 = scmp.ne.s32.totalorder %s27_s13, %s489_s21  ;;  %p495_p5 = scmp.lt.s32.totalorder %s489_s21, %s489_s21 }
   0xc   :  { %p496_p6 = por %p495_p5, %p494_p4 }
   0xe   :  { %p497_p7 = pnand %p496_p6, %p490_p3 }
  0x10   :  { %500 = shalt.err (!%p497_p7)
}
  0x11   :  { %s574_s22 = smov 256   ;;  %s575_s23 = smov 16  }
  0x12   :  { %32 = dma.hbm_to_vmem [thread:$0]  %s649_s1, 4096, %s27_s13, [#allocation6], %s574_s22, %s574_s22, %s575_s23  }
  0x13   :  { %s576_s26 = smov [#allocation2]   ;;  %s577_s28 = smov [#allocation7]  }
  0x14   :  { %s17_s27 = sshll.u32 %s576_s26, 4  ;;  %s39_s29 = sshll.u32 %s577_s28, 4  ;;  %s18_s27 = int_to_ptr.vmem [resolvable:$true] %s17_s27  ;;  %s40_s29 = int_to_ptr.vmem [resolvable:$true] %s39_s29 }
  0x15   :  { %s501_s5 = scalar_lea.hbm %s648_s0, 64 }
  0x16   :  { %p502_p8 = scmp.ne.s32.totalorder %s648_s0, %s501_s5  ;;  %p505_p9 = scmp.lt.u32.totalorder %s501_s5, %s648_s0 }
  0x18   :  { %p507_p10 = pnand %p505_p9, %p502_p8 }
  0x1a   :  { %510 = shalt.err (!%p507_p10)
}
  0x1b   :  { %s511_s1 = scalar_lea.vmem %s18_s27, 64  ;;  %p516_p12 = scmp.lt.s32.totalorder %s18_s27, %s18_s27 }
  0x1c   :  { %p512_p11 = scmp.ne.s32.totalorder %s18_s27, %s511_s1  ;;  %p517_p13 = scmp.lt.s32.totalorder %s511_s1, %s511_s1 }
  0x1e   :  { %p518_p0 = por %p517_p13, %p516_p12 }
  0x20   :  { %p519_p1 = pnand %p518_p0, %p512_p11 }
  0x22   :  { %522 = shalt.err (!%p519_p1)
}
  0x23   :  { %20 = dma.hbm_to_vmem [thread:$0]  %s648_s0, 64, %s18_s27, [#allocation3]  }
  0x24   :  { %s523_s14 = scalar_lea.hbm %s650_s2, 64 }
  0x25   :  { %p524_p2 = scmp.ne.s32.totalorder %s650_s2, %s523_s14  ;;  %p527_p3 = scmp.lt.u32.totalorder %s523_s14, %s650_s2 }
  0x27   :  { %p529_p4 = pnand %p527_p3, %p524_p2 }
  0x29   :  { %532 = shalt.err (!%p529_p4)
}
  0x2a   :  { %s533_s19 = scalar_lea.vmem %s40_s29, 64  ;;  %p538_p6 = scmp.lt.s32.totalorder %s40_s29, %s40_s29 }
  0x2b   :  { %p534_p5 = scmp.ne.s32.totalorder %s40_s29, %s533_s19  ;;  %p539_p7 = scmp.lt.s32.totalorder %s533_s19, %s533_s19 }
  0x2d   :  { %p540_p8 = por %p539_p7, %p538_p6 }
  0x2f   :  { %p541_p9 = pnand %p540_p8, %p534_p5 }
  0x31   :  { %544 = shalt.err (!%p541_p9)
}
  0x32   :  { %42 = dma.hbm_to_vmem [thread:$0]  %s650_s2, 64, %s40_s29, [#allocation6]  }
  0x33   :  { %567 = dma.done.wait [#allocation3], 64  }
  0x34   :  { %568 = vsyncadd [#allocation3], 4294967232 }
  0x35   :  { %569 = dma.done.wait [#allocation6], 4160  }
  0x36   :  { %570 = vsyncadd [#allocation6], 4294963136  ;;  %v578_v0 = vmov 0   ;;  %v431_v1 = vld [vmem:[#allocation5 + $0x4] ss:$16 sps:$4 sm:$0xff]   ;;  %v88_v34 = vlaneseq  ;;  %s579_s2 = smov [#allocation8]  }
  0x37   :  { %300 = vmatprep.mubr.bf16.mxu0 %v578_v0  ;;  %341 = vmatprep.mubr.bf16.mxu1 %v578_v0  ;;  %v433_v2 = vld [vmem:[#allocation5 + $0xc] ss:$16 sps:$4 sm:$0xff]   ;;  %v435_v3 = vld [vmem:[#allocation5] ss:$16 sps:$4 sm:$0xff]   ;;  %v436_v4 = vld [vmem:[#allocation5 + $0x8] ss:$16 sps:$4 sm:$0xff]  }
  0x38   :  { %268 = vmatprep.subr.bf16.mxu0 %v431_v1  ;;  %309 = vmatprep.subr.bf16.mxu1 %v433_v2  ;;  %v437_v5 = vld [vmem:[#allocation5 + $0x24] ss:$16 sps:$4 sm:$0xff]   ;;  %v439_v6 = vld [vmem:[#allocation5 + $0x2c] ss:$16 sps:$4 sm:$0xff]   ;;  %v441_v7 = vld [vmem:[#allocation5 + $0x20] ss:$16 sps:$4 sm:$0xff]  }
  0x39   :  { %269 = vmatpush1.bf16.msra.mxu0 %v435_v3  ;;  %310 = vmatpush1.bf16.msra.mxu1 %v436_v4  ;;  %v442_v8 = vld [vmem:[#allocation5 + $0x28] ss:$16 sps:$4 sm:$0xff]   ;;  %v443_v9 = vld [vmem:[#allocation5 + $0x44] ss:$16 sps:$4 sm:$0xff]   ;;  %v445_v10 = vld [vmem:[#allocation5 + $0x4c] ss:$16 sps:$4 sm:$0xff]  }
  0x3a   :  { %270 = vmatprep.subr.bf16.mxu0 %v437_v5  ;;  %311 = vmatprep.subr.bf16.mxu1 %v439_v6  ;;  %v447_v11 = vld [vmem:[#allocation5 + $0x40] ss:$16 sps:$4 sm:$0xff]   ;;  %v448_v12 = vld [vmem:[#allocation5 + $0x48] ss:$16 sps:$4 sm:$0xff]   ;;  %v449_v13 = vld [vmem:[#allocation5 + $0x64] ss:$16 sps:$4 sm:$0xff]  }
  0x3b   :  { %v451_v14 = vld [vmem:[#allocation5 + $0x6c] ss:$16 sps:$4 sm:$0xff]   ;;  %v453_v15 = vld [vmem:[#allocation5 + $0x60] ss:$16 sps:$4 sm:$0xff]   ;;  %v454_v16 = vld [vmem:[#allocation5 + $0x68] ss:$16 sps:$4 sm:$0xff]  }
  0x3c   :  { %v455_v17 = vld [vmem:[#allocation5 + $0x84] ss:$16 sps:$4 sm:$0xff]   ;;  %v457_v18 = vld [vmem:[#allocation5 + $0x8c] ss:$16 sps:$4 sm:$0xff]   ;;  %v459_v19 = vld [vmem:[#allocation5 + $0x80] ss:$16 sps:$4 sm:$0xff]  }
  0x3d   :  { %271 = vmatpush1.bf16.msra.mxu0 %v441_v7  ;;  %312 = vmatpush1.bf16.msra.mxu1 %v442_v8  ;;  %v460_v20 = vld [vmem:[#allocation5 + $0x88] ss:$16 sps:$4 sm:$0xff]   ;;  %v461_v21 = vld [vmem:[#allocation5 + $0xa4] ss:$16 sps:$4 sm:$0xff]   ;;  %v463_v22 = vld [vmem:[#allocation5 + $0xac] ss:$16 sps:$4 sm:$0xff]  }
  0x3e   :  { %272 = vmatprep.subr.bf16.mxu0 %v443_v9  ;;  %313 = vmatprep.subr.bf16.mxu1 %v445_v10  ;;  %v465_v23 = vld [vmem:[#allocation5 + $0xa0] ss:$16 sps:$4 sm:$0xff]   ;;  %v466_v24 = vld [vmem:[#allocation5 + $0xa8] ss:$16 sps:$4 sm:$0xff]   ;;  %v467_v25 = vld [vmem:[#allocation5 + $0xc4] ss:$16 sps:$4 sm:$0xff]  }
  0x3f   :  { %v469_v26 = vld [vmem:[#allocation5 + $0xcc] ss:$16 sps:$4 sm:$0xff]   ;;  %v471_v27 = vld [vmem:[#allocation5 + $0xc0] ss:$16 sps:$4 sm:$0xff]   ;;  %v472_v28 = vld [vmem:[#allocation5 + $0xc8] ss:$16 sps:$4 sm:$0xff]  }
  0x40   :  { %v473_v29 = vld [vmem:[#allocation5 + $0xe4] ss:$16 sps:$4 sm:$0xff]   ;;  %v475_v30 = vld [vmem:[#allocation5 + $0xec] ss:$16 sps:$4 sm:$0xff]   ;;  %v477_v31 = vld [vmem:[#allocation5 + $0xe0] ss:$16 sps:$4 sm:$0xff]  }
  0x41   :  { %273 = vmatpush1.bf16.msra.mxu0 %v447_v11  ;;  %314 = vmatpush1.bf16.msra.mxu1 %v448_v12  ;;  %v478_v32 = vld [vmem:[#allocation5 + $0xe8] ss:$16 sps:$4 sm:$0xff]   ;;  %v53_v33 = vld [vmem:[#allocation2] sm:$0xf]  ;;  %v89_v35 = vshrl.u32 %v88_v34, 7  ;;  %s378_s21 = sshll.u32 %s579_s2, 4  ;;  %s379_s21 = int_to_ptr.vmem [resolvable:$true] %s378_s21 }
  0x42   :  { %274 = vmatprep.subr.bf16.mxu0 %v449_v13  ;;  %315 = vmatprep.subr.bf16.mxu1 %v451_v14  ;;  %v86_v38 = vld [vmem:[#allocation7] sm:$0xf]  ;;  %s545_s22 = scalar_lea.vmem %s379_s21, 256  ;;  %p550_p11 = scmp.lt.s32.totalorder %s379_s21, %s379_s21 }
  0x43   :  { %v90_v36 = vsub.s32 0, %v89_v35  ;;  %v98_v37 = vsub.s32 2, %v89_v35  ;;  %v94_v39 = vsub.s32 1, %v89_v35  ;;  %v102_v40 = vsub.s32 3, %v89_v35  ;;  %p546_p10 = scmp.ne.s32.totalorder %s379_s21, %s545_s22  ;;  %p551_p12 = scmp.lt.s32.totalorder %s545_s22, %s545_s22 }
  0x45   :  { %275 = vmatpush1.bf16.msra.mxu0 %v453_v15  ;;  %316 = vmatpush1.bf16.msra.mxu1 %v454_v16  ;;  %v91_v41 = vrot.slane %v86_v38, %v90_v36  ;;  %v99_v42 = vrot.slane %v86_v38, %v98_v37  ;;  %v95_v43 = vrot.slane %v86_v38, %v94_v39  ;;  %p552_p13 = por %p551_p12, %p550_p11 }
  0x46   :  { %276 = vmatprep.subr.bf16.mxu0 %v455_v17  ;;  %317 = vmatprep.subr.bf16.mxu1 %v457_v18  ;;  %v103_v44 = vrot.slane %v86_v38, %v102_v40 }
  0x47   :  { %p553_p0 = pnand %p552_p13, %p546_p10 }
  0x49   :  { %277 = vmatpush1.bf16.msra.mxu0 %v459_v19  ;;  %318 = vmatpush1.bf16.msra.mxu1 %v460_v20 }
  0x4a   :  { %278 = vmatprep.subr.bf16.mxu0 %v461_v21  ;;  %319 = vmatprep.subr.bf16.mxu1 %v463_v22 }
  0x4d   :  { %279 = vmatpush1.bf16.msra.mxu0 %v465_v23  ;;  %320 = vmatpush1.bf16.msra.mxu1 %v466_v24 }
  0x4e   :  { %280 = vmatprep.subr.bf16.mxu0 %v467_v25  ;;  %321 = vmatprep.subr.bf16.mxu1 %v469_v26 }
  0x51   :  { %281 = vmatpush1.bf16.msra.mxu0 %v471_v27  ;;  %322 = vmatpush1.bf16.msra.mxu1 %v472_v28 }
  0x52   :  { %282 = vmatprep.subr.bf16.mxu0 %v473_v29  ;;  %323 = vmatprep.subr.bf16.mxu1 %v475_v30 }
  0x55   :  { %283 = vmatpush1.bf16.msra.mxu0 %v477_v31  ;;  %324 = vmatpush1.bf16.msra.mxu1 %v478_v32 }
  0x58   :  { %301 = vmatmul.mubr.bf16.vlgmr.msra.gmra.mrb[0].mxu0 %v53_v33  ;;  %342 = vmatmul.mubr.bf16.vlgmr.msra.gmra.mrb[0].mxu1 %v53_v33 }
 0x12b   :  { %v302_v45 = vpop.f32.mrb[0].mxu0  ;;  %v343_v46 = vpop.f32.mrb[0].mxu1 }
 0x12c   :  { %v303_v47 = vadd.f32 %v302_v45, %v91_v41  ;;  %v344_v48 = vadd.f32 %v343_v46, %v99_v42  ;;  %v304_v49 = vpop.f32.mrb[1].mxu0  ;;  %v345_v50 = vpop.f32.mrb[1].mxu1 }
 0x12d   :  { %v305_v51 = vadd.f32 %v304_v49, %v95_v43  ;;  %v346_v52 = vadd.f32 %v345_v50, %v103_v44  ;;  %v306_v53 = vpop.f32.mrb[2].mxu0  ;;  %v347_v54 = vpop.f32.mrb[2].mxu1 }
 0x12e   :  { %v350_v55 = vmax.f32 %v303_v47, 0.0  ;;  %v352_v56 = vmax.f32 %v344_v48, 0.0  ;;  %v307_v57 = vpop.f32.mrb[3].mxu0  ;;  %v348_v58 = vpop.f32.mrb[3].mxu1 }
 0x12f   :  { %v351_v59 = vmax.f32 %v305_v51, 0.0  ;;  %v353_v60 = vmax.f32 %v346_v52, 0.0 }
 0x131   :  { %v422_v61 = vpack.c.bf16 %v351_v59, %v350_v55  ;;  %v423_v62 = vpack.c.bf16 %v353_v60, %v352_v56 }
 0x133   :  { %370 = vst [vmem:[#allocation8] sm:$0xff] %v422_v61  ;;  %371 = vst [vmem:[#allocation8 + $0x8] sm:$0xff] %v423_v62 }
 0x134   :  { %556 = shalt.err (!%p553_p0)
}
 0x135   :  { %s557_s25 = scalar_lea.hbm %s651_s3, 256 }
 0x136   :  { %p558_p1 = scmp.ne.s32.totalorder %s651_s3, %s557_s25  ;;  %p561_p2 = scmp.lt.u32.totalorder %s557_s25, %s651_s3 }
 0x138   :  { %p563_p3 = pnand %p561_p2, %p558_p1 }
 0x13a   :  { %566 = shalt.err (!%p563_p3)
}
 0x13b   :  { %381 = dma.vmem_to_hbm [thread:$0]  %s379_s21, 256, %s651_s3, [#allocation4]  }
 0x13c   :  { %571 = dma.done.wait [#allocation4], 256  }
 0x13d   :  { %572 = vsyncadd [#allocation4], 4294967040 }
 0x13e   :  { %385 = vsyncpa [#allocation3], 1 }
 0x13f   :  { %386 = vsyncpa [#allocation6], 1 }
 0x140   :  { %387 = vsyncpa [#allocation4], 1 }

</bundles_post_ra>
